<compile_context>
chip_gen: v6e
topology: v6e:2x2x1
jax: 0.10.0
libtpu: 0.0.40
codegen_flags: <defaults>
</compile_context>

<pallas_src>
import jax
import jax.numpy as jnp
from jax import lax
from jax.experimental import pallas as pl
from jax.experimental.pallas import tpu as pltpu

BN_EPS = 1e-5  # PyTorch BatchNorm1d default


def expert_ffnn_kernel(x_ref, w1_ref, params_ref, b2_ref, o_ref):
    # x_ref:      (B, F)  inputs, native layout (no wrapper transpose)
    # w1_ref:     (H, F)  nn.Linear(input, hidden).weight (PyTorch layout)
    # params_ref: (H, 4)  packed columns [b1 | gamma | beta | w2]
    # b2_ref:     (1,)    SMEM scalar, nn.Linear(hidden, 1).bias
    # o_ref:      (1, B)  lane-dense output (wrapper reshapes to (B, 1))
    x = x_ref[...]
    p = params_ref[...]
    b1 = p[:, 0:1]      # (H, 1)
    gamma = p[:, 1:2]   # (H, 1)
    beta = p[:, 2:3]    # (H, 1)
    w2 = p[:, 3:4]      # (H, 1)

    batch = x.shape[0]          # static
    inv_b = 1.0 / batch

    # Linear 1 + bias + ReLU, batch on the lane axis:
    #   hT = W1 @ x^T -> (H, B)   (MXU; contraction over the feature axes)
    h = lax.dot_general(
        w1_ref[...], x,
        dimension_numbers=(((1,), (1,)), ((), ())),
        preferred_element_type=jnp.float32,
    )
    h = jnp.maximum(h + b1, 0.0)                          # (H, B)

    # BatchNorm1d training-mode batch statistics over the batch (lane) axis,
    # centered two-pass variance (robust for non-negative post-ReLU h).
    mean = jnp.sum(h, axis=-1, keepdims=True) * inv_b     # (H, 1)
    d = h - mean                                          # (H, B) centered
    var = jnp.sum(d * d, axis=-1, keepdims=True) * inv_b  # (H, 1)
    inv_std = lax.rsqrt(var + BN_EPS)                     # EUP slot

    # Fold BN affine (scale/shift) with the (H -> 1) output projection:
    #   out_b = sum_H( (h-mean)[:,b] * gamma*inv_std*w2 ) + sum_H(beta*w2) + b2
    w_eff = gamma * inv_std * w2                          # (H, 1)
    c = jnp.sum(beta * w2) + b2_ref[0]                    # scalar

    # Lane-dense (1, B) result: sublane-axis reduce over H (XLU).
    o_ref[...] = jnp.sum(d * w_eff, axis=0, keepdims=True) + c


def expert_ffnn(x, w1, b1, gamma, beta, w2, b2):
    """ExpertFFNN forward with training-mode BatchNorm batch statistics.

    x:     (B, input_size) f32
    w1:    (hidden, input)  -- nn.Linear(input, hidden).weight
    b1:    (hidden,)        -- nn.Linear(input, hidden).bias
    gamma: (hidden,)        -- BatchNorm1d.weight
    beta:  (hidden,)        -- BatchNorm1d.bias
    w2:    (1, hidden)      -- nn.Linear(hidden, 1).weight
    b2:    (1,)             -- nn.Linear(hidden, 1).bias
    returns (B, 1) f32
    """
    B = x.shape[0]
    H = w1.shape[0]
    f32 = jnp.float32

    # Pack the four per-feature parameter vectors into one (H, 4) operand.
    params = jnp.stack(
        [b1.astype(f32), gamma.astype(f32), beta.astype(f32),
         w2.reshape(H).astype(f32)],
        axis=1,
    )

    vmem = pl.BlockSpec(memory_space=pltpu.MemorySpace.VMEM)
    smem = pl.BlockSpec(memory_space=pltpu.MemorySpace.SMEM)

    out_t = pl.pallas_call(
        expert_ffnn_kernel,
        out_shape=jax.ShapeDtypeStruct((1, B), f32),
        in_specs=[vmem, vmem, vmem, smem],
        out_specs=vmem,
    )(
        x.astype(f32),            # (B, F), no HBM transpose
        w1.astype(f32),           # (H, F)
        params,                   # (H, 4)
        b2.reshape(1).astype(f32),
    )
    # (1, B) -> (B, 1): identical memory layout, just a cheap reshape.
    return out_t.reshape(B, 1)


def reference(x, w1, b1, gamma, beta, w2, b2):
    h = jnp.maximum(x @ w1.T + b1, 0.0)
    mean = jnp.mean(h, axis=0, keepdims=True)
    var = jnp.mean((h - mean) ** 2, axis=0, keepdims=True)
    h = (h - mean) / jnp.sqrt(var + BN_EPS) * gamma + beta
    return h @ w2.T + b2


if __name__ == "__main__":
    batch = 8
    input_size = 16
    hidden_size = 32

    key = jax.random.PRNGKey(0)
    kx, k1, kb1, k2, kb2 = jax.random.split(key, 5)

    x = jax.random.normal(kx, (batch, input_size), dtype=jnp.float32)

    # Deterministic synthetic parameters in native PyTorch layouts.
    w1 = (jax.random.normal(k1, (hidden_size, input_size), dtype=jnp.float32)
          / jnp.sqrt(input_size))
    b1 = (jax.random.normal(kb1, (hidden_size,), dtype=jnp.float32)
          / jnp.sqrt(input_size))
    gamma = jnp.ones((hidden_size,), dtype=jnp.float32)    # BatchNorm1d.weight
    beta = jnp.zeros((hidden_size,), dtype=jnp.float32)    # BatchNorm1d.bias
    w2 = (jax.random.normal(k2, (1, hidden_size), dtype=jnp.float32)
          / jnp.sqrt(hidden_size))
    b2 = (jax.random.normal(kb2, (1,), dtype=jnp.float32)
          / jnp.sqrt(hidden_size))

    out = expert_ffnn(x, w1, b1, gamma, beta, w2, b2)
    out = jax.block_until_ready(out)

    ref = reference(x, w1, b1, gamma, beta, w2, b2)
    assert out.shape == (batch, 1)
    assert jnp.allclose(out, ref, atol=1e-4, rtol=1e-4)

    print("KERNEL_OK")
</pallas_src>

<mosaic_0001>
module attributes {stable_mosaic.version = 11 : i64} {
  func.func @expert_ffnn_kernel(%arg0: memref<8x16xf32, #tpu.memory_space<vmem>>, %arg1: memref<32x16xf32, #tpu.memory_space<vmem>>, %arg2: memref<32x4xf32, #tpu.memory_space<vmem>>, %arg3: memref<1xf32, #tpu.memory_space<smem>>, %arg4: memref<1x8xf32, #tpu.memory_space<vmem>>) attributes {dimension_semantics = [], scalar_prefetch = 0 : i64, scratch_operands = 0 : i64, tpu.core_type = #tpu.core_type<tc>} {
    %c0 = arith.constant 0 : index
    %c0_0 = arith.constant 0 : index
    %0 = vector.load %arg0[%c0, %c0_0] : memref<8x16xf32, #tpu.memory_space<vmem>>, vector<8x16xf32>
    %c0_1 = arith.constant 0 : index
    %c0_2 = arith.constant 0 : index
    %1 = vector.load %arg2[%c0_1, %c0_2] : memref<32x4xf32, #tpu.memory_space<vmem>>, vector<32x4xf32>
    %2 = vector.extract_strided_slice %1 {offsets = [0, 0], sizes = [32, 1], strides = [1, 1]} : vector<32x4xf32> to vector<32x1xf32>
    %3 = vector.extract_strided_slice %1 {offsets = [0, 1], sizes = [32, 1], strides = [1, 1]} : vector<32x4xf32> to vector<32x1xf32>
    %4 = vector.extract_strided_slice %1 {offsets = [0, 2], sizes = [32, 1], strides = [1, 1]} : vector<32x4xf32> to vector<32x1xf32>
    %5 = vector.extract_strided_slice %1 {offsets = [0, 3], sizes = [32, 1], strides = [1, 1]} : vector<32x4xf32> to vector<32x1xf32>
    %c0_3 = arith.constant 0 : index
    %c0_4 = arith.constant 0 : index
    %6 = vector.load %arg1[%c0_3, %c0_4] : memref<32x16xf32, #tpu.memory_space<vmem>>, vector<32x16xf32>
    %cst = arith.constant dense<0.000000e+00> : vector<32x8xf32>
    %7 = tpu.matmul %6, %0, %cst {dimension_numbers = #tpu.dot_dimension_numbers<[1], [1], [0], [0], [0, 0, 1, 0], [], []>} : vector<32x16xf32>, vector<8x16xf32>, vector<32x8xf32> -> vector<32x8xf32>
    %8 = vector.broadcast %2 : vector<32x1xf32> to vector<32x8xf32>
    %9 = arith.addf %7, %8 : vector<32x8xf32>
    %cst_5 = arith.constant 0.000000e+00 : f32
    %10 = vector.broadcast %cst_5 : f32 to vector<32x8xf32>
    %11 = arith.maximumf %9, %10 : vector<32x8xf32>
    %cst_6 = arith.constant dense<0.000000e+00> : vector<32xf32>
    %12 = vector.multi_reduction <add>, %11, %cst_6 [1] : vector<32x8xf32> to vector<32xf32>
    %13 = vector.shape_cast %12 : vector<32xf32> to vector<32x1xf32>
    %cst_7 = arith.constant 1.250000e-01 : f32
    %14 = vector.broadcast %cst_7 : f32 to vector<32x1xf32>
    %15 = arith.mulf %13, %14 : vector<32x1xf32>
    %16 = vector.broadcast %15 : vector<32x1xf32> to vector<32x8xf32>
    %17 = arith.subf %11, %16 : vector<32x8xf32>
    %18 = arith.mulf %17, %17 : vector<32x8xf32>
    %cst_8 = arith.constant dense<0.000000e+00> : vector<32xf32>
    %19 = vector.multi_reduction <add>, %18, %cst_8 [1] : vector<32x8xf32> to vector<32xf32>
    %20 = vector.shape_cast %19 : vector<32xf32> to vector<32x1xf32>
    %cst_9 = arith.constant 1.250000e-01 : f32
    %21 = vector.broadcast %cst_9 : f32 to vector<32x1xf32>
    %22 = arith.mulf %20, %21 : vector<32x1xf32>
    %cst_10 = arith.constant 9.99999974E-6 : f32
    %23 = vector.broadcast %cst_10 : f32 to vector<32x1xf32>
    %24 = arith.addf %22, %23 : vector<32x1xf32>
    %25 = math.rsqrt %24 : vector<32x1xf32>
    %26 = arith.mulf %3, %25 : vector<32x1xf32>
    %27 = arith.mulf %26, %5 : vector<32x1xf32>
    %28 = arith.mulf %4, %5 : vector<32x1xf32>
    %29 = vector.shape_cast %28 : vector<32x1xf32> to vector<1x32x1xf32>
    %cst_11 = arith.constant dense<0.000000e+00> : vector<1xf32>
    %30 = vector.multi_reduction <add>, %29, %cst_11 [1, 2] : vector<1x32x1xf32> to vector<1xf32>
    %31 = vector.shape_cast %30 : vector<1xf32> to vector<1x1x1xf32>
    %32 = vector.extract %31[0, 0, 0] : f32 from vector<1x1x1xf32>
    %c0_12 = arith.constant 0 : index
    %33 = memref.load %arg3[%c0_12] : memref<1xf32, #tpu.memory_space<smem>>
    %34 = arith.addf %32, %33 : f32
    %35 = vector.broadcast %27 : vector<32x1xf32> to vector<32x8xf32>
    %36 = arith.mulf %17, %35 : vector<32x8xf32>
    %cst_13 = arith.constant dense<0.000000e+00> : vector<8xf32>
    %37 = vector.multi_reduction <add>, %36, %cst_13 [0] : vector<32x8xf32> to vector<8xf32>
    %38 = vector.shape_cast %37 : vector<8xf32> to vector<1x8xf32>
    %39 = vector.broadcast %34 : f32 to vector<1x8xf32>
    %40 = arith.addf %38, %39 : vector<1x8xf32>
    %c0_14 = arith.constant 0 : index
    %c0_15 = arith.constant 0 : index
    %41 = vector.load %arg4[%c0_14, %c0_15] : memref<1x8xf32, #tpu.memory_space<vmem>>, vector<1x8xf32>
    tpu.vector_store %arg4[%c0_14, %c0_15], %40 {strides = array<i32>} : memref<1x8xf32, #tpu.memory_space<vmem>>, vector<1x8xf32>,
    return
  }
}

</mosaic_0001>

<bundles_post_ra>
// kernel: tpu_custom_call.1
= control target key start
LH: loop header
LB: loop body
LE: loop exit
PB: predicated region body
PF: predicated region fallthrough
CT: control target
= control target key end

     0   :  { %vm48_vm0 = vcmask 130048   ;;  %s528_s0 = inlined_call_operand.vmem [shape: f32[8,16], index: 0, kind: input, shape index: {}]   ;;  %s529_s1 = inlined_call_operand.vmem [shape: f32[32,16], index: 1, kind: input, shape index: {}]   ;;  %s530_s2 = inlined_call_operand.vmem [shape: f32[32,4], index: 2, kind: input, shape index: {}]   ;;  %s531_s3 = inlined_call_operand.<no memory space> [shape: f32[1], index: 3, kind: input, shape index: {}]   ;;  %s532_s4 = inlined_call_operand.hbm [shape: f32[1,8], index: 4, kind: output, shape index: {}]  }
   0x1   :  { %v19_v0 = vld [vmem:[%s528_s0] sm:$0xff]  ;;  %v26_v2 = vld [vmem:[%s529_s1 + $0x10] sm:$0xff]  ;;  %v25_v3 = vld [vmem:[%s529_s1 + $0x8] sm:$0xff] }
   0x2   :  { %v24_v1 = vld [vmem:[%s529_s1] sm:$0xff]  ;;  %338 = vmatprep.subr.msk.mxu0 %vm48_vm0, %v19_v0  ;;  %346 = vmatprep.subr.msk.mxu1 %vm48_vm0, %v19_v0  ;;  %v27_v4 = vld [vmem:[%s529_s1 + $0x18] sm:$0xff]  ;;  %v448_v6 = vld [vmem:[%s530_s2 + $0x10] sm:$0xff] }
   0x3   :  { %339 = vmatpush3.xpose.msk.msra.mxu0 %vm48_vm0, %v19_v0  ;;  %347 = vmatpush3.xpose.msk.msra.mxu1 %vm48_vm0, %v19_v0  ;;  %v443_v5 = vld [vmem:[%s530_s2] sm:$0xff] }
   0x4   :  { %340 = vmatprep.mubr.msk.f32.mxu0 %vm48_vm0, %v24_v1  ;;  %343 = vmatprep.mubr.msk.f32.mxu1 %vm48_vm0, %v26_v2 }
   0x5   :  { %10 = vsyncpa [#allocation4], 0  ;;  %v389_v7 = vmov 0   ;;  %v457_v8 = vld [vmem:[%s530_s2 + $0x8] sm:$0xff]  ;;  %v462_v9 = vld [vmem:[%s530_s2 + $0x18] sm:$0xff]  ;;  %s390_s5 = smov 127  }
   0x6   :  { %355 = vset.pattern.permute.xlu0 %v389_v7  ;;  %356 = vset.pattern.permute.xlu1 %v389_v7  ;;  %vm153_vm1 = vcmask 64512   ;;  %s391_s2 = smov 126   ;;  %v392_v58 = vmov 1   ;;  %vm254_vm2 = vcmask 7168   ;;  %s393_s10 = smov [#allocation3]   ;;  %vm312_vm3 = vcmask 57344  }
   0x7   :  { %341 = vmatmul.mubr.msk.f32.vlgmr.msra.gmra.mxu0 %vm48_vm0, %v25_v3  ;;  %344 = vmatmul.mubr.msk.f32.vlgmr.msra.gmra.mxu1 %vm48_vm0, %v27_v4  ;;  %s320_s11 = sshll.u32 %s393_s10, 4  ;;  %s321_s11 = int_to_ptr.vmem [resolvable:$true] %s320_s11 }
   0x8   :  { %30 = vperm.xlu0 %355, %v443_v5   ;;  %40 = vperm.xlu1 %356, %v448_v6   ;;  %s367_s12 = scalar_lea.vmem %s321_s11, 16  ;;  %s371_s13 = scalar_lea.vmem %s321_s11, 32 }
   0x9   :  { %p368_p0 = scmp.ne.s32.totalorder %s321_s11, %s367_s12  ;;  %p372_p1 = scmp.lt.s32.totalorder %s321_s11, %s321_s11 }
   0xa   :  { %p373_p2 = scmp.lt.s32.totalorder %s371_s13, %s367_s12 }
   0xc   :  { %35 = vperm.xlu0 %355, %v457_v8   ;;  %45 = vperm.xlu1 %356, %v462_v9   ;;  %p374_p3 = por %p373_p2, %p372_p1 }
   0xe   :  { %p375_p4 = pnand %p374_p3, %p368_p0 }
  0x10   :  { %224 = vrot.lane.b32.xlu1 %v457_v8, %s390_s5  ;;  %222 = vrot.lane.b32.xlu0 %v443_v5, %s390_s5 }
  0x11   :  { %357 = vset.pattern.permute.xlu1 %v392_v58  ;;  %358 = vset.pattern.permute.xlu0 %v392_v58 }
  0x14   :  { %228 = vrot.lane.b32.xlu1 %v462_v9, %s390_s5  ;;  %226 = vrot.lane.b32.xlu0 %v448_v6, %s390_s5 }
  0x83   :  { %v31_v10 = vpop.permute.xlu0 %30  ;;  %v41_v11 = vpop.permute.xlu1 %40 }
  0x87   :  { %v36_v12 = vpop.permute.xlu0 %35  ;;  %v46_v21 = vpop.permute.xlu1 %45 }
  0x8b   :  { %v223_v29 = vpop.permute.xlu0 %222  ;;  %v225_v31 = vpop.permute.xlu1 %224 }
  0x8c   :  { %v234_v32 = vmul.f32 %v223_v29, %v443_v5  ;;  %v235_v37 = vmul.f32 %v225_v31, %v457_v8 }
  0x8f   :  { %v227_v33 = vpop.permute.xlu0 %226  ;;  %v229_v35 = vpop.permute.xlu1 %228 }
  0x90   :  { %v236_v34 = vmul.f32 %v227_v33, %v448_v6  ;;  %v237_v36 = vmul.f32 %v229_v35, %v462_v9 }
  0xc7   :  { %v342_v13 = vpop.f32.mrf.mxu0  ;;  %v345_v14 = vpop.f32.mrf.mxu1 }
  0xc8   :  { %v136_v15 = vadd.f32 %v342_v13, %v36_v12  ;;  %v146_v24 = vadd.f32 %v345_v14, %v46_v21 }
  0xc9   :  { %v130_v16 = vpop.f32.mrf.mxu0  ;;  %v140_v17 = vpop.f32.mrf.mxu1 }
  0xca   :  { %v150_v18 = vmax.f32 %v136_v15, 0.0  ;;  %v131_v19 = vadd.f32 %v130_v16, %v31_v10  ;;  %v141_v20 = vadd.f32 %v140_v17, %v41_v11  ;;  %v152_v27 = vmax.f32 %v146_v24, 0.0 }
  0xcc   :  { %v149_v22 = vmax.f32 %v131_v19, 0.0  ;;  %v157_v23 = vsel %vm153_vm1, %v150_v18, 0.0  ;;  %v151_v25 = vmax.f32 %v141_v20, 0.0  ;;  %v163_v30 = vsel %vm153_vm1, %v152_v27, 0.0 }
  0xcd   :  { %158 = vadd.xlane.f32.xlu1 %v157_v23 }
  0xce   :  { %v154_v26 = vsel %vm153_vm1, %v149_v22, 0.0  ;;  %v160_v28 = vsel %vm153_vm1, %v151_v25, 0.0 }
  0xcf   :  { %155 = vadd.xlane.f32.xlu0 %v154_v26 }
  0xd3   :  { %161 = vadd.xlane.f32.xlu0 %v160_v28 }
  0xd7   :  { %164 = vadd.xlane.f32.xlu0 %v163_v30 }
  0xde   :  { %242 = vrot.lane.b32.xlu1 %v234_v32, %s391_s2 }
  0xe2   :  { %246 = vrot.lane.b32.xlu1 %v236_v34, %s391_s2 }
  0xe6   :  { %248 = vrot.lane.b32.xlu1 %v237_v36, %s391_s2 }
  0xea   :  { %206 = vrot.lane.b32.xlu1 %v443_v5, %s391_s2 }
  0xed   :  { %244 = vrot.lane.b32.xlu0 %v235_v37, %s391_s2 }
 0x156   :  { %v159_v38 = vpop.xlane.xlu1 %158 }
 0x157   :  { %v167_v39 = vmul.f32 0.125, %v159_v38 }
 0x158   :  { %v156_v40 = vpop.xlane.xlu0 %155 }
 0x159   :  { %v484_v41 = vsub.f32 %v150_v18, %v167_v39  ;;  %v166_v45 = vmul.f32 0.125, %v156_v40 }
 0x15a   :  { %v243_v59 = vpop.permute.xlu1 %242 }
 0x15b   :  { %v175_v42 = vmul.f32 %v484_v41, %v484_v41  ;;  %v489_v48 = vsub.f32 %v149_v22, %v166_v45  ;;  %v255_v62 = vsel %vm254_vm2, %v243_v59, 0.0 }
 0x15c   :  { %v162_v43 = vpop.xlane.xlu0 %161 }
 0x15d   :  { %v181_v44 = vsel %vm153_vm1, %v175_v42, 0.0  ;;  %v168_v49 = vmul.f32 0.125, %v162_v43  ;;  %v174_v54 = vmul.f32 %v489_v48, %v489_v48 }
 0x15e   :  { %182 = vadd.xlane.f32.xlu1 %v181_v44  ;;  %v247_v61 = vpop.permute.xlu1 %246 }
 0x15f   :  { %v495_v52 = vsub.f32 %v151_v25, %v168_v49  ;;  %v178_v55 = vsel %vm153_vm1, %v174_v54, 0.0  ;;  %v258_v1 = vsel %vm254_vm2, %v247_v61, 0.0 }
 0x160   :  { %v165_v46 = vpop.xlane.xlu0 %164 }
 0x161   :  { %v169_v47 = vmul.f32 0.125, %v165_v46  ;;  %v176_v56 = vmul.f32 %v495_v52, %v495_v52 }
 0x162   :  { %v249_v2 = vpop.permute.xlu1 %248 }
 0x163   :  { %v491_v50 = vsub.f32 %v152_v27, %v169_v47  ;;  %v184_v57 = vsel %vm153_vm1, %v176_v56, 0.0  ;;  %v260_v4 = vsel %vm254_vm2, %v249_v2, 0.0 }
 0x164   :  { %v245_v60 = vpop.permute.xlu0 %244 }
 0x165   :  { %v177_v51 = vmul.f32 %v491_v50, %v491_v50  ;;  %v256_v63 = vsel %vm254_vm2, %v245_v60, 0.0 }
 0x166   :  { %v257_v0 = vadd.f32 %v256_v63, %v255_v62  ;;  %v207_v10 = vpop.permute.xlu1 %206 }
 0x167   :  { %v187_v53 = vsel %vm153_vm1, %v177_v51, 0.0 }
 0x168   :  { %188 = vadd.xlane.f32.xlu0 %v187_v53  ;;  %v259_v3 = vadd.f32 %v258_v1, %v257_v0 }
 0x16a   :  { %v261_v7 = vadd.f32 %v260_v4, %v259_v3 }
 0x16c   :  { %179 = vadd.xlane.f32.xlu0 %v178_v55 }
 0x16f   :  { %210 = vrot.lane.b32.xlu1 %v448_v6, %s391_s2 }
 0x170   :  { %185 = vadd.xlane.f32.xlu0 %v184_v57 }
 0x173   :  { %212 = vrot.lane.b32.xlu1 %v462_v9, %s391_s2 }
 0x186   :  { %208 = vrot.lane.b32.xlu0 %v457_v8, %s391_s2 }
 0x1a5   :  { %262 = vadd.xlane.f32.xlu0 %v261_v7 }
 0x1e7   :  { %v183_v11 = vpop.xlane.xlu1 %182 }
 0x1e8   :  { %v191_v12 = vmul.f32 0.125, %v183_v11 }
 0x1ea   :  { %v195_v13 = vadd.f32 1e-05, %v191_v12 }
 0x1eb   :  { %v211_v29 = vpop.permute.xlu1 %210 }
 0x1ec   :  { %359 = vrsqrt.f32 %v195_v13 }
 0x1ef   :  { %v213_v36 = vpop.permute.xlu1 %212 }
 0x1f1   :  { %v189_v14 = vpop.xlane.xlu0 %188 }
 0x1f2   :  { %v193_v15 = vmul.f32 0.125, %v189_v14 }
 0x1f4   :  { %v197_v20 = vadd.f32 1e-05, %v193_v15 }
 0x1f5   :  { %v180_v16 = vpop.xlane.xlu0 %179 }
 0x1f6   :  { %v190_v17 = vmul.f32 0.125, %v180_v16 }
 0x1f8   :  { %v194_v18 = vadd.f32 1e-05, %v190_v17 }
 0x1f9   :  { %v360_v19 = vpop.eup %359  ;;  %v186_v21 = vpop.xlane.xlu0 %185 }
 0x1fa   :  { %361 = vrsqrt.f32 %v194_v18  ;;  %v192_v22 = vmul.f32 0.125, %v186_v21  ;;  %v203_v24 = vmul.f32 %v360_v19, %v457_v8 }
 0x1fb   :  { %363 = vrsqrt.f32 %v197_v20 }
 0x1fc   :  { %v196_v23 = vadd.f32 1e-05, %v192_v22 }
 0x1fd   :  { %v209_v25 = vpop.permute.xlu0 %208 }
 0x1fe   :  { %365 = vrsqrt.f32 %v196_v23  ;;  %v219_v26 = vmul.f32 %v209_v25, %v203_v24 }
 0x200   :  { %280 = vperm.xlu1 %357, %v219_v26  }
 0x207   :  { %v362_v27 = vpop.eup %361 }
 0x208   :  { %v202_v28 = vmul.f32 %v362_v27, %v443_v5  ;;  %v364_v30 = vpop.eup %363 }
 0x209   :  { %v205_v35 = vmul.f32 %v364_v30, %v462_v9 }
 0x20a   :  { %v218_v31 = vmul.f32 %v207_v10, %v202_v28 }
 0x20b   :  { %v366_v32 = vpop.eup %365  ;;  %v221_v8 = vmul.f32 %v213_v36, %v205_v35 }
 0x20c   :  { %v204_v33 = vmul.f32 %v366_v32, %v448_v6  ;;  %275 = vperm.xlu1 %357, %v218_v31  }
 0x20e   :  { %v220_v34 = vmul.f32 %v211_v29, %v204_v33 }
 0x210   :  { %285 = vperm.xlu1 %357, %v220_v34  }
 0x214   :  { %290 = vperm.xlu1 %357, %v221_v8  }
 0x22e   :  { %v263_v37 = vpop.xlane.xlu0 %262 }
 0x22f   :  { %v264_v38 = vrot.slane %v263_v37, 4 }
 0x231   :  { %v265_v39 = vadd.f32 %v264_v38, %v263_v37 }
 0x233   :  { %v266_v40 = vrot.slane %v265_v39, 2 }
 0x235   :  { %v267_v42 = vadd.f32 %v266_v40, %v265_v39 }
 0x237   :  { %v268_v5 = vrot.slane %v267_v42, 1 }
 0x239   :  { %v269_v43 = vadd.f32 %v268_v5, %v267_v42 }
 0x23b   :  { %348 = vpush %v269_v43 }
 0x26c   :  { %s349_s6 = spop %348 }
 0x26d   :  { %s272_s9 = sadd.f32 %s349_s6, %s531_s3 }
 0x26f   :  { %v310_v63 = vstv %s272_s9 }
 0x27b   :  { %v281_v44 = vpop.permute.xlu1 %280 }
 0x27c   :  { %v294_v46 = vmul.f32 %v281_v44, %v484_v41 }
 0x27e   :  { %v298_v51 = vsel %vm153_vm1, %v294_v46, 0.0 }
 0x287   :  { %v276_v45 = vpop.permute.xlu1 %275 }
 0x288   :  { %v293_v6 = vmul.f32 %v276_v45, %v489_v48 }
 0x28a   :  { %v297_v9 = vsel %vm153_vm1, %v293_v6, 0.0 }
 0x28b   :  { %v286_v47 = vpop.permute.xlu1 %285  ;;  %v299_v54 = vadd.f32 %v298_v51, %v297_v9 }
 0x28c   :  { %v295_v49 = vmul.f32 %v286_v47, %v495_v52 }
 0x28e   :  { %v300_v53 = vsel %vm153_vm1, %v295_v49, 0.0 }
 0x28f   :  { %v291_v55 = vpop.permute.xlu1 %290  ;;  %v301_v57 = vadd.f32 %v300_v53, %v299_v54 }
 0x290   :  { %v296_v56 = vmul.f32 %v291_v55, %v491_v50 }
 0x292   :  { %v302_v58 = vsel %vm153_vm1, %v296_v56, 0.0 }
 0x293   :  { %v303_v59 = vadd.f32 %v302_v58, %v301_v57 }
 0x295   :  { %v304_v48 = vrot.slane %v303_v59, 4 }
 0x297   :  { %v305_v60 = vadd.f32 %v304_v48, %v303_v59 }
 0x299   :  { %v306_v41 = vrot.slane %v305_v60, 2 }
 0x29b   :  { %v307_v61 = vadd.f32 %v306_v41, %v305_v60 }
 0x29d   :  { %v308_v52 = vrot.slane %v307_v61, 1 }
 0x29f   :  { %v309_v62 = vadd.f32 %v308_v52, %v307_v61 }
 0x2a1   :  { %v311_v50 = vadd.f32 %v310_v63, %v309_v62 }
 0x2a3   :  { %313 = vst.msk [vmem:[#allocation3] sm:$0x1] %vm312_vm3, %v311_v50 }
 0x2a4   :  { %378 = shalt.err (!%p375_p4)
}
 0x2a5   :  { %323 = dma.vmem_to_hbm [thread:$0]  %s321_s11, 16, %s532_s4, [#allocation4]  }
 0x2a6   :  { %387 = dma.done.wait [#allocation4], 16  }
 0x2a7   :  { %388 = vsyncadd [#allocation4], 4294967280 }
 0x2a8   :  { %327 = vsyncpa [#allocation4], 1 }

</bundles_post_ra>
